<compile_context>
chip_gen: v7x
topology: tpu7x:2x2x1
jax: 0.10.0
libtpu: 0.0.40
codegen_flags: <defaults>
</compile_context>

<pallas_src>
import numpy as np
import jax
import jax.numpy as jnp
from jax import lax
from jax.experimental import pallas as pl
from jax.experimental.pallas import tpu as pltpu
from scipy.optimize import linear_sum_assignment


def _round_up(x, m):
    return (x + m - 1) // m * m


def _tpu_vmem_and_cores():
    """(vmem_capacity_bytes, tensorcores_per_chip) with safe fallbacks."""
    kind = ""
    try:
        kind = jax.devices()[0].device_kind.lower()
    except Exception:
        pass
    is_v7 = "v7" in kind
    vmem = None
    try:
        vmem = getattr(pltpu.get_tpu_info(), "vmem_capacity_bytes", None)
    except Exception:
        vmem = None
    if vmem is None:
        vmem = (64 if is_v7 else 128) * 1024 * 1024
    num_tc = 2 if is_v7 else 1
    return int(vmem), num_tc


# ----------------------------------------------------------------------------
# Kernel: pairwise Euclidean distance matrix, tiled over output and features.
# Norms arrive precomputed; the gram accumulates straight into cost_ref.
# ----------------------------------------------------------------------------
def _cost_kernel(x1_ref, x2_ref, sq1_ref, sq2_ref, cost_ref):
    k = pl.program_id(2)

    @pl.when(k == 0)
    def _():
        cost_ref[...] = jnp.zeros_like(cost_ref)

    # Gram chunk x1 @ x2.T on the MXU, f32 accumulation into the resident
    # output tile (output block index is constant along the k axis).
    cost_ref[...] += lax.dot_general(
        x1_ref[...], x2_ref[...], (((1,), (1,)), ((), ())),
        preferred_element_type=jnp.float32)

    @pl.when(k == pl.num_programs(2) - 1)
    def _():
        # ||x1||^2 + ||x2||^2 - 2<x1,x2> can go slightly negative from
        # cancellation for near-identical rows; clamp before the sqrt.
        d2 = sq1_ref[...] + sq2_ref[...] - 2.0 * cost_ref[...]
        cost_ref[...] = jnp.sqrt(jnp.maximum(d2, 0.0))


def _pick_output_tile(b, num_tc):
    # Largest MXU-friendly tile dividing B (256-multiples feed the 256x256
    # MXU of v6e/v7x fully; 512 maximizes input reuse on v5e's low HBM BW).
    tile = b
    for cand in (512, 256, 128):
        if b >= cand and b % cand == 0:
            tile = cand
            break
    # v7x: keep >= num_tc parallel (i, j) tiles so both TensorCores get work.
    while (num_tc > 1 and tile > 128
           and (b // tile) * (b // tile) < num_tc
           and tile % 2 == 0 and b % (tile // 2) == 0):
        tile //= 2
    return tile


def _pick_tk(d, tm, tn, itemsize, budget):
    # Largest feature chunk (multiple of 128 dividing D) whose double-buffered
    # inputs + resident output tile + padded norm inputs fit the VMEM budget.
    def footprint(tk):
        inputs = 2 * (tm + tn) * tk * itemsize      # 2 pipeline buffers each
        norms = 2 * (tm * 128 + 8 * tn) * 4          # (tm,1)/(1,tn) pad to tile
        outputs = 2 * tm * tn * 4                    # cost tile (f32)
        return inputs + norms + outputs

    if footprint(d) <= budget:
        return d                                     # single reduction step
    n = d // 128
    for m in range(n, 0, -1):                        # largest divisor first
        if n % m == 0 and footprint(m * 128) <= budget:
            return m * 128
    return 128


def pairwise_euclidean(x1, x2, *, bf16_gram=False):
    """cost[i, j] = ||x1[i] - x2[j]||_2 via a tiled Pallas TPU kernel."""
    b, d = x1.shape

    # Row norms once, in f32, outside the kernel's k loop.
    sq1 = jnp.sum(x1.astype(jnp.float32) ** 2, axis=1, keepdims=True)   # (b,1)
    sq2 = jnp.sum(x2.astype(jnp.float32) ** 2, axis=1, keepdims=True).T  # (1,b)

    xd1, xd2 = x1, x2
    if bf16_gram and x1.dtype == jnp.float32:
        # Opt-in: bf16 MXU operands (f32 norms + f32 accumulator retained).
        xd1 = x1.astype(jnp.bfloat16)
        xd2 = x2.astype(jnp.bfloat16)

    vmem_bytes, num_tc = _tpu_vmem_and_cores()
    tile_budget = int(vmem_bytes * 0.45)
    vmem_limit = int(vmem_bytes * 0.75)

    # Pad to TPU-friendly extents (zero pad is exact for Euclidean distance);
    # result is sliced back to (b, b).
    b_pad = _round_up(b, 128) if b >= 128 else _round_up(b, 8)
    d_pad = _round_up(d, 128)
    if (b_pad, d_pad) != (b, d):
        xd1 = jnp.pad(xd1, ((0, b_pad - b), (0, d_pad - d)))
        xd2 = jnp.pad(xd2, ((0, b_pad - b), (0, d_pad - d)))
        sq1 = jnp.pad(sq1, ((0, b_pad - b), (0, 0)))
        sq2 = jnp.pad(sq2, ((0, 0), (0, b_pad - b)))

    tm = tn = _pick_output_tile(b_pad, num_tc)
    tk = _pick_tk(d_pad, tm, tn, np.dtype(xd1.dtype).itemsize, tile_budget)
    grid = (b_pad // tm, b_pad // tn, d_pad // tk)

    cost = pl.pallas_call(
        _cost_kernel,
        out_shape=jax.ShapeDtypeStruct((b_pad, b_pad), jnp.float32),
        grid=grid,
        in_specs=[
            pl.BlockSpec((tm, tk), lambda i, j, k: (i, k)),
            pl.BlockSpec((tn, tk), lambda i, j, k: (j, k)),
            pl.BlockSpec((tm, 1), lambda i, j, k: (i, 0)),
            pl.BlockSpec((1, tn), lambda i, j, k: (0, j)),
        ],
        out_specs=pl.BlockSpec((tm, tn), lambda i, j, k: (i, j)),
        compiler_params=pltpu.CompilerParams(
            dimension_semantics=("parallel", "parallel", "arbitrary"),
            vmem_limit_bytes=vmem_limit,
        ),
    )(xd1, xd2, sq1, sq2)

    if (b_pad, d_pad) != (b, d):
        cost = cost[:b, :b]
    return cost


# ----------------------------------------------------------------------------
# FeatureLoss forward (mirrors the PyTorch module semantics)
# ----------------------------------------------------------------------------
class FeatureLoss:
    def __init__(self, reduction="sum", alpha=1.0):
        self.reduction = reduction
        self.alpha = float(alpha)

    def __call__(self, x1, x2):
        assert x1.shape == x2.shape, "the embedings are not the same"
        if x1.ndim != 2:
            x1 = x1.reshape(x1.shape[0], -1)
            x2 = x2.reshape(x2.shape[0], -1)
        b = x1.shape[0]

        # cost = ot.dist(x1, x2, metric='euclidean')  -> Pallas kernel
        cost = pairwise_euclidean(x1, x2)

        # gamma = ot.emd(unif(b), unif(b), cost)
        # TODO(synk): exact network-simplex EMD has no Pallas equivalent; for
        # uniform square marginals gamma = (1/b) * optimal permutation, solved
        # on host with the Hungarian algorithm (this is a full device sync).
        cost_np = np.asarray(jax.device_get(cost), dtype=np.float64)
        rows, cols = linear_sum_assignment(cost_np)

        # gamma is a scaled permutation; the cost matrix is already on host,
        # so alpha * sum(gamma * cost) reduces there (no extra device gather).
        loss_sum = self.alpha * float(cost_np[rows, cols].sum()) / b

        if self.reduction == "mean":
            return jnp.asarray(loss_sum / (b * b), dtype=jnp.float32)
        elif self.reduction == "sum":
            return jnp.asarray(loss_sum, dtype=jnp.float32)
        else:
            raise ValueError(
                f"loss reduction type {self.reduction} is not known")


if __name__ == "__main__":
    key = jax.random.PRNGKey(0)
    k1, k2 = jax.random.split(key)

    # non-2D inputs are flattened to (B, -1) by the module, as in the spec
    x1 = jax.random.normal(k1, (8, 4, 16, 16), dtype=jnp.float32)
    x2 = jax.random.normal(k2, (8, 4, 16, 16), dtype=jnp.float32)

    loss_fn = FeatureLoss(reduction="sum", alpha=1.0)
    loss = loss_fn(x1, x2)
    jax.block_until_ready(loss)

    # sanity check the Pallas cost path against a pure-JAX reference
    x1f = x1.reshape(8, -1)
    x2f = x2.reshape(8, -1)
    ref_cost = jnp.sqrt(jnp.maximum(
        jnp.sum((x1f[:, None, :] - x2f[None, :, :]) ** 2, axis=-1), 0.0))
    pallas_cost = pairwise_euclidean(x1f, x2f)
    assert pallas_cost.shape == (8, 8)
    assert jnp.allclose(ref_cost, pallas_cost, atol=2e-3, rtol=1e-4)

    # opt-in bf16-gram fast path (looser tolerance: bf16 MXU operands)
    pallas_cost_bf16 = pairwise_euclidean(x1f, x2f, bf16_gram=True)
    assert jnp.allclose(ref_cost, pallas_cost_bf16, atol=5e-2, rtol=5e-3)

    # reference loss via the same host assignment on the reference cost
    ref_cost_np = np.asarray(jax.device_get(ref_cost), dtype=np.float64)
    r, c = linear_sum_assignment(ref_cost_np)
    ref_loss = ref_cost_np[r, c].sum() / 8.0
    assert jnp.isfinite(loss)
    assert abs(float(loss) - ref_loss) <= 2e-3 * abs(ref_loss) + 1e-3

    print("KERNEL_OK")
</pallas_src>

<mosaic_0001>
module attributes {stable_mosaic.version = 11 : i64} {
  func.func @_cost_kernel(%arg0: i32, %arg1: i32, %arg2: i32, %arg3: memref<8x1024xf32, #tpu.memory_space<vmem>>, %arg4: memref<8x1024xf32, #tpu.memory_space<vmem>>, %arg5: memref<8x1xf32, #tpu.memory_space<vmem>>, %arg6: memref<1x8xf32, #tpu.memory_space<vmem>>, %arg7: memref<8x8xf32, #tpu.memory_space<vmem>>) attributes {dimension_semantics = [#tpu.dimension_semantics<parallel>, #tpu.dimension_semantics<parallel>, #tpu.dimension_semantics<arbitrary>], iteration_bounds = array<i64: 1, 1, 1>, scalar_prefetch = 0 : i64, scratch_operands = 0 : i64, tpu.core_type = #tpu.core_type<tc>, window_params = [{transform_indices = @transform_0, window_bounds = array<i64: 8, 1024>}, {transform_indices = @transform_1, window_bounds = array<i64: 8, 1024>}, {transform_indices = @transform_2, window_bounds = array<i64: 8, 1>}, {transform_indices = @transform_3, window_bounds = array<i64: 1, 8>}, {transform_indices = @transform_4, window_bounds = array<i64: 8, 8>}]} {
    %c0_i32 = arith.constant 0 : i32
    %0 = arith.cmpi eq, %arg2, %c0_i32 : i32
    %1 = arith.extui %0 : i1 to i32
    %c0_i32_0 = arith.constant 0 : i32
    %2 = arith.cmpi ne, %1, %c0_i32_0 : i32
    scf.if %2 {
      %cst_10 = arith.constant 0.000000e+00 : f32
      %12 = vector.broadcast %cst_10 : f32 to vector<8x8xf32>
      %c0_11 = arith.constant 0 : index
      %c0_12 = arith.constant 0 : index
      %13 = vector.load %arg7[%c0_11, %c0_12] : memref<8x8xf32, #tpu.memory_space<vmem>>, vector<8x8xf32>
      tpu.vector_store %arg7[%c0_11, %c0_12], %12 {strides = array<i32>} : memref<8x8xf32, #tpu.memory_space<vmem>>, vector<8x8xf32>,
    } else {
    }
    %c0 = arith.constant 0 : index
    %c0_1 = arith.constant 0 : index
    %3 = vector.load %arg7[%c0, %c0_1] : memref<8x8xf32, #tpu.memory_space<vmem>>, vector<8x8xf32>
    %c0_2 = arith.constant 0 : index
    %c0_3 = arith.constant 0 : index
    %4 = vector.load %arg3[%c0_2, %c0_3] : memref<8x1024xf32, #tpu.memory_space<vmem>>, vector<8x1024xf32>
    %c0_4 = arith.constant 0 : index
    %c0_5 = arith.constant 0 : index
    %5 = vector.load %arg4[%c0_4, %c0_5] : memref<8x1024xf32, #tpu.memory_space<vmem>>, vector<8x1024xf32>
    %cst = arith.constant dense<0.000000e+00> : vector<8x8xf32>
    %6 = tpu.matmul %4, %5, %cst {dimension_numbers = #tpu.dot_dimension_numbers<[1], [1], [0], [0], [0, 0, 1, 0], [], []>} : vector<8x1024xf32>, vector<8x1024xf32>, vector<8x8xf32> -> vector<8x8xf32>
    %7 = arith.addf %3, %6 : vector<8x8xf32>
    %c0_6 = arith.constant 0 : index
    %c0_7 = arith.constant 0 : index
    %8 = vector.load %arg7[%c0_6, %c0_7] : memref<8x8xf32, #tpu.memory_space<vmem>>, vector<8x8xf32>
    tpu.vector_store %arg7[%c0_6, %c0_7], %7 {strides = array<i32>} : memref<8x8xf32, #tpu.memory_space<vmem>>, vector<8x8xf32>,
    %c0_i32_8 = arith.constant 0 : i32
    %9 = arith.cmpi eq, %arg2, %c0_i32_8 : i32
    %10 = arith.extui %9 : i1 to i32
    %c0_i32_9 = arith.constant 0 : i32
    %11 = arith.cmpi ne, %10, %c0_i32_9 : i32
    scf.if %11 {
      %c0_10 = arith.constant 0 : index
      %c0_11 = arith.constant 0 : index
      %12 = vector.load %arg5[%c0_10, %c0_11] : memref<8x1xf32, #tpu.memory_space<vmem>>, vector<8x1xf32>
      %c0_12 = arith.constant 0 : index
      %c0_13 = arith.constant 0 : index
      %13 = vector.load %arg6[%c0_12, %c0_13] : memref<1x8xf32, #tpu.memory_space<vmem>>, vector<1x8xf32>
      %14 = vector.broadcast %12 : vector<8x1xf32> to vector<8x8xf32>
      %15 = vector.broadcast %13 : vector<1x8xf32> to vector<8x8xf32>
      %16 = arith.addf %14, %15 : vector<8x8xf32>
      %c0_14 = arith.constant 0 : index
      %c0_15 = arith.constant 0 : index
      %17 = vector.load %arg7[%c0_14, %c0_15] : memref<8x8xf32, #tpu.memory_space<vmem>>, vector<8x8xf32>
      %cst_16 = arith.constant 2.000000e+00 : f32
      %18 = vector.broadcast %cst_16 : f32 to vector<8x8xf32>
      %19 = arith.mulf %18, %17 : vector<8x8xf32>
      %20 = arith.subf %16, %19 : vector<8x8xf32>
      %cst_17 = arith.constant 0.000000e+00 : f32
      %21 = vector.broadcast %cst_17 : f32 to vector<8x8xf32>
      %22 = arith.maximumf %20, %21 : vector<8x8xf32>
      %23 = math.sqrt %22 : vector<8x8xf32>
      %c0_18 = arith.constant 0 : index
      %c0_19 = arith.constant 0 : index
      %24 = vector.load %arg7[%c0_18, %c0_19] : memref<8x8xf32, #tpu.memory_space<vmem>>, vector<8x8xf32>
      tpu.vector_store %arg7[%c0_18, %c0_19], %23 {strides = array<i32>} : memref<8x8xf32, #tpu.memory_space<vmem>>, vector<8x8xf32>,
    } else {
    }
    return
  }
  func.func @transform_0(%arg0: i32, %arg1: i32, %arg2: i32) -> (i32, i32) {
    %c0_i32 = arith.constant 0 : i32
    return %arg0, %arg2 : i32, i32
  }
  func.func @transform_1(%arg0: i32, %arg1: i32, %arg2: i32) -> (i32, i32) {
    %c0_i32 = arith.constant 0 : i32
    return %arg1, %arg2 : i32, i32
  }
  func.func @transform_2(%arg0: i32, %arg1: i32, %arg2: i32) -> (i32, i32) {
    %c0_i32 = arith.constant 0 : i32
    %c0_i32_0 = arith.constant 0 : i32
    return %arg0, %c0_i32 : i32, i32
  }
  func.func @transform_3(%arg0: i32, %arg1: i32, %arg2: i32) -> (i32, i32) {
    %c0_i32 = arith.constant 0 : i32
    %c0_i32_0 = arith.constant 0 : i32
    return %c0_i32, %arg1 : i32, i32
  }
  func.func @transform_4(%arg0: i32, %arg1: i32, %arg2: i32) -> (i32, i32) {
    %c0_i32 = arith.constant 0 : i32
    return %arg0, %arg1 : i32, i32
  }
}

</mosaic_0001>

<bundles_post_ra>
// kernel: tpu_custom_call.1
= control target key start
LH: loop header
LB: loop body
LE: loop exit
PB: predicated region body
PF: predicated region fallthrough
CT: control target
= control target key end

     0   :  { %9 = vsyncpa [#allocation3], 0  ;;  %s641_s0 = inlined_call_operand.hbm [shape: f32[8,1024], index: 0, kind: input, shape index: {}]   ;;  %s642_s1 = inlined_call_operand.hbm [shape: f32[8,1024], index: 1, kind: input, shape index: {}]   ;;  %s643_s2 = inlined_call_operand.hbm [shape: f32[8,1], index: 2, kind: input, shape index: {}]   ;;  %s644_s3 = inlined_call_operand.hbm [shape: f32[1,8], index: 3, kind: input, shape index: {}]   ;;  %s645_s4 = inlined_call_operand.hbm [shape: f32[8,8], index: 4, kind: output, shape index: {}]  }
   0x1   :  { %10 = vsyncpa [#allocation6], 0 }
   0x2   :  { %11 = vsyncpa [#allocation9], 0 }
   0x3   :  { %12 = vsyncpa [#allocation4], 0  ;;  %s546_s15 = smov [#allocation5]   ;;  %s547_s17 = smov [#allocation2]  }
   0x4   :  { %s29_s16 = sshll.u32 %s546_s15, 4  ;;  %s19_s18 = sshll.u32 %s547_s17, 4  ;;  %s30_s16 = int_to_ptr.vmem [resolvable:$true] %s29_s16  ;;  %s20_s18 = int_to_ptr.vmem [resolvable:$true] %s19_s18 }
   0x5   :  { %s428_s21 = scalar_lea.hbm %s642_s1, 1024 }
   0x6   :  { %p429_p0 = scmp.ne.s32.totalorder %s642_s1, %s428_s21  ;;  %p432_p1 = scmp.lt.u32.totalorder %s428_s21, %s642_s1 }
   0x8   :  { %p434_p2 = pnand %p432_p1, %p429_p0 }
   0xa   :  { %437 = shalt.err (!%p434_p2)
}
   0xb   :  { %s438_s26 = scalar_lea.vmem %s30_s16, 1024  ;;  %p443_p4 = scmp.lt.s32.totalorder %s30_s16, %s30_s16 }
   0xc   :  { %p439_p3 = scmp.ne.s32.totalorder %s30_s16, %s438_s26  ;;  %p444_p5 = scmp.lt.s32.totalorder %s438_s26, %s438_s26 }
   0xe   :  { %p445_p6 = por %p444_p5, %p443_p4 }
  0x10   :  { %p446_p7 = pnand %p445_p6, %p439_p3 }
  0x12   :  { %449 = shalt.err (!%p446_p7)
}
  0x13   :  { %32 = dma.hbm_to_vmem [thread:$0]  %s642_s1, 1024, %s30_s16, [#allocation6]  }
  0x14   :  { %s450_s5 = scalar_lea.hbm %s641_s0, 1024 }
  0x15   :  { %p451_p8 = scmp.ne.s32.totalorder %s641_s0, %s450_s5  ;;  %p454_p9 = scmp.lt.u32.totalorder %s450_s5, %s641_s0 }
  0x17   :  { %p456_p10 = pnand %p454_p9, %p451_p8 }
  0x19   :  { %459 = shalt.err (!%p456_p10)
}
  0x1a   :  { %s460_s10 = scalar_lea.vmem %s20_s18, 1024  ;;  %p465_p12 = scmp.lt.s32.totalorder %s20_s18, %s20_s18 }
  0x1b   :  { %p461_p11 = scmp.ne.s32.totalorder %s20_s18, %s460_s10  ;;  %p466_p13 = scmp.lt.s32.totalorder %s460_s10, %s460_s10 }
  0x1d   :  { %p467_p0 = por %p466_p13, %p465_p12 }
  0x1f   :  { %p468_p1 = pnand %p467_p0, %p461_p11 }
  0x21   :  { %471 = shalt.err (!%p468_p1)
}
  0x22   :  { %22 = dma.hbm_to_vmem [thread:$0]  %s641_s0, 1024, %s20_s18, [#allocation3]  }
  0x23   :  { %s548_s12 = smov [#allocation7]   ;;  %s549_s14 = smov [#allocation8]  }
  0x24   :  { %s39_s13 = sshll.u32 %s548_s12, 4  ;;  %s49_s15 = sshll.u32 %s549_s14, 4  ;;  %s40_s13 = int_to_ptr.vmem [resolvable:$true] %s39_s13  ;;  %s50_s15 = int_to_ptr.vmem [resolvable:$true] %s49_s15 }
  0x25   :  { %s472_s19 = scalar_lea.hbm %s643_s2, 128 }
  0x26   :  { %p473_p2 = scmp.ne.s32.totalorder %s643_s2, %s472_s19  ;;  %p476_p3 = scmp.lt.u32.totalorder %s472_s19, %s643_s2 }
  0x28   :  { %p478_p4 = pnand %p476_p3, %p473_p2 }
  0x2a   :  { %481 = shalt.err (!%p478_p4)
}
  0x2b   :  { %s482_s0 = scalar_lea.vmem %s40_s13, 128  ;;  %p487_p6 = scmp.lt.s32.totalorder %s40_s13, %s40_s13 }
  0x2c   :  { %p483_p5 = scmp.ne.s32.totalorder %s40_s13, %s482_s0  ;;  %p488_p7 = scmp.lt.s32.totalorder %s482_s0, %s482_s0 }
  0x2e   :  { %p489_p8 = por %p488_p7, %p487_p6 }
  0x30   :  { %p490_p9 = pnand %p489_p8, %p483_p5 }
  0x32   :  { %493 = shalt.err (!%p490_p9)
}
  0x33   :  { %42 = dma.hbm_to_vmem [thread:$0]  %s643_s2, 128, %s40_s13, [#allocation6]  }
  0x34   :  { %s494_s27 = scalar_lea.hbm %s644_s3, 16 }
  0x35   :  { %p495_p10 = scmp.ne.s32.totalorder %s644_s3, %s494_s27  ;;  %p498_p11 = scmp.lt.u32.totalorder %s494_s27, %s644_s3 }
  0x37   :  { %p500_p12 = pnand %p498_p11, %p495_p10 }
  0x39   :  { %503 = shalt.err (!%p500_p12)
}
  0x3a   :  { %s504_s6 = scalar_lea.vmem %s50_s15, 16  ;;  %s508_s7 = scalar_lea.vmem %s50_s15, 32 }
  0x3b   :  { %p505_p13 = scmp.ne.s32.totalorder %s50_s15, %s504_s6  ;;  %p509_p0 = scmp.lt.s32.totalorder %s50_s15, %s50_s15 }
  0x3c   :  { %p510_p1 = scmp.lt.s32.totalorder %s508_s7, %s504_s6 }
  0x3e   :  { %p511_p2 = por %p510_p1, %p509_p0 }
  0x40   :  { %p512_p3 = pnand %p511_p2, %p505_p13 }
  0x42   :  { %515 = shalt.err (!%p512_p3)
}
  0x43   :  { %52 = dma.hbm_to_vmem [thread:$0]  %s644_s3, 16, %s50_s15, [#allocation9]  }
  0x44   :  { %538 = dma.done.wait [#allocation3], 1024  }
  0x45   :  { %539 = vsyncadd [#allocation3], 4294966272 }
  0x46   :  { %540 = dma.done.wait [#allocation6], 1152  }
  0x47   :  { %541 = vsyncadd [#allocation6], 4294966144 }
  0x48   :  { %542 = dma.done.wait [#allocation9], 16  }
  0x49   :  { %543 = vsyncadd [#allocation9], 4294967280  ;;  %v550_v0 = vmov 0   ;;  %v81_v1 = vld [vmem:[#allocation5 + $0x8] sm:$0xff]  ;;  %v80_v2 = vld [vmem:[#allocation5] sm:$0xff]  ;;  %vm69_vm0 = vcmask 64512  }
  0x4a   :  { %425 = vset.pattern.permute.xlu0 %v550_v0  ;;  %v83_v3 = vld [vmem:[#allocation5 + $0x18] sm:$0xff]  ;;  %88 = vmatprep.subr.mxu0 %v81_v1  ;;  %v82_v4 = vld [vmem:[#allocation5 + $0x10] sm:$0xff]  ;;  %v73_v5 = vld [vmem:[#allocation2 + $0x8] sm:$0xff]  ;;  %v551_v18 = vmov 0.0   ;;  %s552_s3 = smov [#allocation10]  }
  0x4b   :  { %158 = vmatprep.subr.mxu1 %v83_v3  ;;  %v72_v6 = vld [vmem:[#allocation2] sm:$0xff]  ;;  %89 = vmatpush1.xpose.msra.mxu0 %v80_v2  ;;  %v75_v7 = vld [vmem:[#allocation2 + $0x18] sm:$0xff]  ;;  %v85_v8 = vld [vmem:[#allocation5 + $0x28] sm:$0xff]  ;;  %70 = vst.msk [vmem:[#allocation10] sm:$0xff] %vm69_vm0, %v551_v18  ;;  %s406_s9 = sshll.u32 %s552_s3, 4  ;;  %s407_s9 = int_to_ptr.vmem [resolvable:$true] %s406_s9 }
  0x4c   :  { %159 = vmatpush1.xpose.msra.mxu1 %v82_v4  ;;  %v74_v9 = vld [vmem:[#allocation2 + $0x10] sm:$0xff]  ;;  %152 = vmatprep.mubr.f32.mxu0 %v73_v5  ;;  %v84_v10 = vld [vmem:[#allocation5 + $0x20] sm:$0xff]  ;;  %v87_v11 = vld [vmem:[#allocation5 + $0x38] sm:$0xff]  ;;  %s516_s10 = scalar_lea.vmem %s407_s9, 128  ;;  %p521_p5 = scmp.lt.s32.totalorder %s407_s9, %s407_s9 }
  0x4d   :  { %222 = vmatprep.mubr.f32.mxu1 %v75_v7  ;;  %v77_v12 = vld [vmem:[#allocation2 + $0x28] sm:$0xff]  ;;  %228 = vmatprep.subr.mxu0 %v85_v8  ;;  %v86_v13 = vld [vmem:[#allocation5 + $0x30] sm:$0xff]  ;;  %v79_v14 = vld [vmem:[#allocation2 + $0x38] sm:$0xff]  ;;  %p517_p4 = scmp.ne.s32.totalorder %s407_s9, %s516_s10  ;;  %p522_p6 = scmp.lt.s32.totalorder %s516_s10, %s516_s10 }
  0x4e   :  { %298 = vmatprep.subr.mxu1 %v87_v11  ;;  %153 = vmatmul.mubr.f32.vlgmr.msra.gmra.mrb[0].mxu0 %v72_v6  ;;  %v374_v15 = vld [vmem:[#allocation7] sm:$0xff]  ;;  %v78_v17 = vld [vmem:[#allocation2 + $0x30] sm:$0xff]  ;;  %v417_v32 = vld [vmem:[#allocation8] ss:$0 sm:$0xff] }
  0x4f   :  { %223 = vmatmul.mubr.f32.vlgmr.msra.gmra.mrb[0].mxu1 %v74_v9  ;;  %229 = vmatpush1.xpose.msra.mxu0 %v84_v10  ;;  %v76_v16 = vld [vmem:[#allocation2 + $0x20] sm:$0xff]  ;;  %p523_p7 = por %p522_p6, %p521_p5 }
  0x50   :  { %292 = vmatprep.mubr.f32.mxu0 %v77_v12  ;;  %299 = vmatpush1.xpose.msra.mxu1 %v86_v13 }
  0x51   :  { %362 = vmatprep.mubr.f32.mxu1 %v79_v14  ;;  %378 = vperm.xlu0 %425, %v374_v15   ;;  %p524_p8 = pnand %p523_p7, %p517_p4 }
  0x52   :  { %293 = vmatmul.mubr.f32.vlgmr.msra.gmra.mrb[2].mxu0 %v76_v16  ;;  %v71_v28 = vld [vmem:[#allocation10] sm:$0xff] }
  0x53   :  { %363 = vmatmul.mubr.f32.vlgmr.msra.gmra.mrb[2].mxu1 %v78_v17 }
  0xd0   :  { %v379_v33 = vpop.permute.xlu0 %378 }
  0xd1   :  { %v387_v34 = vadd.f32 %v417_v32, %v379_v33 }
 0x121   :  { %v154_v19 = vpop.f32.mrb[0].mxu0 }
 0x122   :  { %v224_v20 = vpop.f32.mrb[0].mxu1  ;;  %v156_v21 = vpop.f32.mrb[1].mxu0 }
 0x123   :  { %v225_v22 = vadd.f32 %v224_v20, %v154_v19  ;;  %v226_v23 = vpop.f32.mrb[1].mxu1 }
 0x125   :  { %v294_v24 = vpop.f32.mrb[2].mxu0 }
 0x126   :  { %v295_v25 = vadd.f32 %v294_v24, %v225_v22  ;;  %v296_v26 = vpop.f32.mrb[3].mxu0  ;;  %v364_v27 = vpop.f32.mrb[2].mxu1 }
 0x127   :  { %v366_v29 = vpop.f32.mrb[3].mxu1 }
 0x128   :  { %v365_v30 = vadd.f32 %v364_v27, %v295_v25 }
 0x12a   :  { %v368_v31 = vadd.f32 %v365_v30, %v71_v28 }
 0x12c   :  { %370 = vst.msk [vmem:[#allocation10] sm:$0xff] %vm69_vm0, %v368_v31 }
 0x133   :  { %v388_v35 = vld [vmem:[#allocation10] sm:$0xff] }
 0x134   :  { %v389_v36 = vmul.f32 2.0, %v388_v35 }
 0x136   :  { %v390_v37 = vsub.f32 %v387_v34, %v389_v36 }
 0x138   :  { %v391_v38 = vmax.f32 %v390_v37, 0.0 }
 0x13a   :  { %426 = vrsqrt.f32 %v391_v38  ;;  %vm394_vm1 = vcmp.eq.f32.partialorder %v391_v38, inf  ;;  %v397_v41 = vand.u32 2147483648, %v391_v38  ;;  %vm396_vm2 = vcmp.eq.f32.partialorder %v391_v38, 0.0 }
 0x144   :  { %v427_v39 = vpop.eup %426 }
 0x145   :  { %v393_v40 = vmul.f32 %v427_v39, %v391_v38 }
 0x147   :  { %v395_v42 = vsel %vm394_vm1, %v391_v38, %v393_v40 }
 0x148   :  { %v398_v43 = vsel %vm396_vm2, %v397_v41, %v395_v42 }
 0x149   :  { %399 = vst.msk [vmem:[#allocation10] sm:$0xff] %vm69_vm0, %v398_v43 }
 0x14a   :  { %527 = shalt.err (!%p524_p8)
}
 0x14b   :  { %s528_s12 = scalar_lea.hbm %s645_s4, 128 }
 0x14c   :  { %p529_p9 = scmp.ne.s32.totalorder %s645_s4, %s528_s12  ;;  %p532_p10 = scmp.lt.u32.totalorder %s528_s12, %s645_s4 }
 0x14e   :  { %p534_p11 = pnand %p532_p10, %p529_p9 }
 0x150   :  { %537 = shalt.err (!%p534_p11)
}
 0x151   :  { %409 = dma.vmem_to_hbm [thread:$0]  %s407_s9, 128, %s645_s4, [#allocation4]  }
 0x152   :  { %544 = dma.done.wait [#allocation4], 128  }
 0x153   :  { %545 = vsyncadd [#allocation4], 4294967168 }
 0x154   :  { %413 = vsyncpa [#allocation3], 1 }
 0x155   :  { %414 = vsyncpa [#allocation6], 1 }
 0x156   :  { %415 = vsyncpa [#allocation9], 1 }
 0x157   :  { %416 = vsyncpa [#allocation4], 1 }

</bundles_post_ra>
